<compile_context>
chip_gen: v6e
topology: v6e:2x2x1
jax: 0.10.0
libtpu: 0.0.40
codegen_flags: <defaults>
</compile_context>

<pallas_src>
import jax
import jax.numpy as jnp
from jax.experimental import pallas as pl
from jax.experimental.pallas import tpu as pltpu


def _round_up(x: int, m: int) -> int:
    return ((x + m - 1) // m) * m


def _mask_kernel(idx_ref, mask_ref):
    """Build one (TILE_OUT, TILE_IN) tile of the dense 0/1 mask.

    idx_ref:  (TILE_OUT, fan_in) int32 -- per-row-tile index block.
    mask_ref: (TILE_OUT, TILE_IN)      -- current output tile.
    """
    tile_out, tile_in = mask_ref.shape
    fan_in = idx_ref.shape[1]

    # Fold the column offset of this tile into the (tiny) index block instead
    # of adding it to the full-tile iota: (tile_out, fan_in) op vs
    # (tile_out, tile_in) op.
    col_start = pl.program_id(1) * tile_in
    idx_local = idx_ref[...] - col_start                    # (tile_out, fan_in)

    col = jax.lax.broadcasted_iota(jnp.int32, (tile_out, tile_in), 1)

    # fan_in is small & static -> unrolled compare + boolean OR, single cast
    # at the end.
    hit = col == idx_local[:, 0:1]
    for k in range(1, fan_in):
        hit = jnp.logical_or(hit, col == idx_local[:, k:k + 1])
    mask_ref[...] = hit.astype(mask_ref.dtype)


def random_fixed_sparsity_mask_2d(key, in_features: int, out_features: int,
                                  fan_in: int, *,
                                  dtype=jnp.float32,
                                  max_tile_in: int = 4096,
                                  block_byte_budget: int = 4 << 20):
    """Returns the (out_features, in_features) mask (the module's forward())."""
    assert 0 < fan_in <= in_features

    # ---- Parameter-setup glue (plain JAX): per row, pick `fan_in` distinct
    # column indices -- equivalent of torch.randperm(in_features)[:fan_in].
    # TODO(synk): this randperm glue runs outside the kernel (setup, not forward).
    row_keys = jax.random.split(key, out_features)
    perm = jax.vmap(
        lambda k: jax.random.permutation(k, in_features)[:fan_in])(row_keys)
    perm = perm.astype(jnp.int32)                           # (out_features, fan_in)

    itemsize = jnp.dtype(dtype).itemsize
    in_aligned = _round_up(in_features, 128)
    out_aligned = _round_up(out_features, 8)

    # ---- Lane tiling: prefer the full 128-aligned width (collapses the j
    # grid axis), capped by max_tile_in to bound VMEM.
    tile_in = min(in_aligned, max_tile_in)

    # ---- Row tiling: largest multiple of 8 keeping one output block plus its
    # (lane-padded) index block inside the byte budget; double-buffering stays
    # well within 32 MiB scoped VMEM (safe on v7x's 64 MiB physical).
    idx_row_bytes = _round_up(fan_in, 128) * 4
    tile_out = max(8, (block_byte_budget // (tile_in * itemsize + idx_row_bytes))
                   // 8 * 8)
    tile_out = min(tile_out, out_aligned)

    # Ensure >=2 blocks on a parallel axis when the whole mask would otherwise
    # be a single block, so v7x's two TensorCores both get work.
    if tile_out >= out_aligned and tile_in >= in_aligned and out_aligned >= 16:
        tile_out = _round_up(out_aligned // 2, 8)

    # pl.cdiv grid with partial edge blocks: no array padding, no post-slice.
    grid = (pl.cdiv(out_features, tile_out), pl.cdiv(in_features, tile_in))

    return pl.pallas_call(
        _mask_kernel,
        out_shape=jax.ShapeDtypeStruct((out_features, in_features), dtype),
        grid=grid,
        in_specs=[
            # Per-row-tile index block; re-DMA'd only when i changes.
            pl.BlockSpec((tile_out, fan_in), lambda i, j: (i, 0)),
        ],
        out_specs=pl.BlockSpec((tile_out, tile_in), lambda i, j: (i, j)),
        compiler_params=pltpu.CompilerParams(
            dimension_semantics=("parallel", "parallel"),
            vmem_limit_bytes=32 << 20,
        ),
    )(perm)


def _check(mask, out_features, in_features, fan_in):
    assert mask.shape == (out_features, in_features)
    row_sums = jnp.sum(mask.astype(jnp.float32), axis=1)
    assert bool(jnp.all(row_sums == fan_in)), row_sums
    assert bool(jnp.all((mask == 0.0) | (mask == 1.0)))


if __name__ == "__main__":
    key = jax.random.PRNGKey(0)

    # Small shapes consistent with the module's __init__.
    in_features, out_features, fan_in = 32, 16, 4
    mask = random_fixed_sparsity_mask_2d(key, in_features, out_features, fan_in)
    mask = jax.block_until_ready(mask)
    assert mask.dtype == jnp.float32
    _check(mask, out_features, in_features, fan_in)

    # A ragged (non-aligned) case exercising partial edge blocks in both axes.
    in_features2, out_features2, fan_in2 = 200, 25, 7
    key2 = jax.random.PRNGKey(1)
    mask2 = random_fixed_sparsity_mask_2d(key2, in_features2, out_features2,
                                          fan_in2)
    mask2 = jax.block_until_ready(mask2)
    _check(mask2, out_features2, in_features2, fan_in2)

    print("KERNEL_OK")
</pallas_src>

<mosaic_0001>
module attributes {stable_mosaic.version = 11 : i64} {
  func.func @_mask_kernel(%arg0: i32, %arg1: i32, %arg2: memref<8x4xi32, #tpu.memory_space<vmem>>, %arg3: memref<8x128xf32, #tpu.memory_space<vmem>>) attributes {dimension_semantics = [#tpu.dimension_semantics<parallel>, #tpu.dimension_semantics<parallel>], iteration_bounds = array<i64: 2, 1>, scalar_prefetch = 0 : i64, scratch_operands = 0 : i64, tpu.core_type = #tpu.core_type<tc>, window_params = [{transform_indices = @transform_0, window_bounds = array<i64: 8, 4>}, {transform_indices = @transform_1, window_bounds = array<i64: 8, 128>}]} {
    %c128_i32 = arith.constant 128 : i32
    %0 = arith.muli %arg1, %c128_i32 : i32
    %c0 = arith.constant 0 : index
    %c0_0 = arith.constant 0 : index
    %1 = vector.load %arg2[%c0, %c0_0] : memref<8x4xi32, #tpu.memory_space<vmem>>, vector<8x4xi32>
    %2 = vector.broadcast %0 : i32 to vector<8x4xi32>
    %3 = arith.subi %1, %2 : vector<8x4xi32>
    %4 = tpu.iota {dimensions = array<i32: 1>} : vector<8x128xi32>
    %5 = vector.extract_strided_slice %3 {offsets = [0, 0], sizes = [8, 1], strides = [1, 1]} : vector<8x4xi32> to vector<8x1xi32>
    %6 = vector.broadcast %5 : vector<8x1xi32> to vector<8x128xi32>
    %7 = arith.cmpi eq, %4, %6 : vector<8x128xi32>
    %8 = vector.extract_strided_slice %3 {offsets = [0, 1], sizes = [8, 1], strides = [1, 1]} : vector<8x4xi32> to vector<8x1xi32>
    %9 = vector.broadcast %8 : vector<8x1xi32> to vector<8x128xi32>
    %10 = arith.cmpi eq, %4, %9 : vector<8x128xi32>
    %11 = arith.ori %7, %10 : vector<8x128xi1>
    %12 = vector.extract_strided_slice %3 {offsets = [0, 2], sizes = [8, 1], strides = [1, 1]} : vector<8x4xi32> to vector<8x1xi32>
    %13 = vector.broadcast %12 : vector<8x1xi32> to vector<8x128xi32>
    %14 = arith.cmpi eq, %4, %13 : vector<8x128xi32>
    %15 = arith.ori %11, %14 : vector<8x128xi1>
    %16 = vector.extract_strided_slice %3 {offsets = [0, 3], sizes = [8, 1], strides = [1, 1]} : vector<8x4xi32> to vector<8x1xi32>
    %17 = vector.broadcast %16 : vector<8x1xi32> to vector<8x128xi32>
    %18 = arith.cmpi eq, %4, %17 : vector<8x128xi32>
    %19 = arith.ori %15, %18 : vector<8x128xi1>
    %20 = arith.extui %19 : vector<8x128xi1> to vector<8x128xi32>
    %21 = arith.sitofp %20 : vector<8x128xi32> to vector<8x128xf32>
    %c0_1 = arith.constant 0 : index
    %c0_2 = arith.constant 0 : index
    %22 = vector.load %arg3[%c0_1, %c0_2] : memref<8x128xf32, #tpu.memory_space<vmem>>, vector<8x128xf32>
    tpu.vector_store %arg3[%c0_1, %c0_2], %21 {strides = array<i32>} : memref<8x128xf32, #tpu.memory_space<vmem>>, vector<8x128xf32>,
    return
  }
  func.func @transform_0(%arg0: i32, %arg1: i32) -> (i32, i32) {
    %c0_i32 = arith.constant 0 : i32
    %c0_i32_0 = arith.constant 0 : i32
    return %arg0, %c0_i32 : i32, i32
  }
  func.func @transform_1(%arg0: i32, %arg1: i32) -> (i32, i32) {
    %c0_i32 = arith.constant 0 : i32
    return %arg0, %arg1 : i32, i32
  }
}

</mosaic_0001>

<bundles_post_ra>
// kernel: tpu_custom_call.1
= control target key start
LH: loop header
LB: loop body
LE: loop exit
PB: predicated region body
PF: predicated region fallthrough
CT: control target
= control target key end

     0   :  { %6 = vsyncpa [#allocation3], 0  ;;  %s519_s0 = inlined_call_operand.vmem [shape: s32[16,4], index: 0, kind: input, shape index: {}]   ;;  %s520_s1 = inlined_call_operand.hbm [shape: f32[16,32], index: 1, kind: output, shape index: {}]  }
   0x1   :  { %8 = vsyncpa [#allocation3 + $0x1], 0  ;;  %s408_s6 = smov 0   ;;  %s410_s7 = smov 0  }
   0x2   :  { %s412_s8 = smov 0   ;;  %s414_s9 = smov 0  }
   0x3   :  { %s416_s10 = smov 0   ;;  %s418_s11 = smov 0  }
   0x4 LB: > { %s237_s12 = sadd.s32 4294967295, %s390_s11   ;;  %s238_s13 = sadd.s32 4294967294, %s390_s11   ;;  %s390_s11 = sphi %s418_s11, %s14_s11   ;;  %s386_s10 = sphi %s416_s10, %s527_s10   ;;  %s382_s9 = sphi %s414_s9, %s526_s9   ;;  %s378_s8 = sphi %s412_s8, %s525_s8   ;;  %s374_s7 = sphi %s410_s7, %s524_s7   ;;  %s370_s6 = sphi %s408_s6, %s523_s6  }
   0x5   : > { %s26_s14 = sadd.s32 1, %s386_s10  ;;  %s61_s15 = sadd.s32 1, %s378_s8 }
   0x6   : > { %p28_p0 = scmp.ge.s32.totalorder %s26_s14, 2  ;;  %p71_p1 = scmp.ne.s32.totalorder %s378_s8, %s374_s7 }
   0x7   : > { %p72_p2 = scmp.eq.s32.totalorder %s237_s12, 1  ;;  %p77_p3 = scmp.ne.s32.totalorder %s374_s7, %s370_s6 }
   0x8   : > { %s529_s14 = smov (%p28_p0, %s26_s14), 0  ;;  %p78_p5 = scmp.eq.s32.totalorder %s238_s13, 1 }
   0x9   : > { %p448_p4 = por %p72_p2, %p71_p1  ;;  %s56_s17 = ssub.s32 %s386_s10, %s529_s14 }
   0xa   : > { %p241_p6 = scmp.ge.s32.totalorder %s390_s11, 1  ;;  %p59_p7 = scmp.eq.s32.totalorder %s56_s17, 0 }
   0xb   : > { %p455_p8 = por %p78_p5, %p77_p3  ;;  %p103_p9 = scmp.lt.s32.totalorder %s390_s11, 3 }
   0xc   : > { %s461_s19 = scalar_select %p59_p7, %s378_s8, %s61_s15  }
   0xd   : > { %p104_p10 = pnand %p241_p6, %p103_p9 }
   0xe   : > { %p122_p11 = scmp.lt.s32.totalorder (!%p104_p10), %s382_s9, 1  ;;  %s119_s25 = sand.u32 (!%p104_p10), 1, %s374_s7  }
   0xf   : > { %107 = sbr.rel (%p104_p10) target bundleno = 172 (0xac), region = 24  ;;  %s242_s26 = sshll.u32 (!%p104_p10), %s119_s25, 3 }
  0x10   : > { %s246_s27 = sshll.u32 (!%p104_p10), %s382_s9, 7  ;;  %s121_s28 = scalar_lea.vmem (!%p104_p10), [#allocation2], %s242_s26 }
  0x11   : > { %s169_s29 = sshll.u32 (!%p104_p10), %s121_s28, 4  ;;  %s473_s3 = scalar_lea.hbm (!%p104_p10), %s520_s1, %s246_s27  ;;  %s475_s29 = int_to_ptr.vmem [resolvable:$true] %s169_s29 }
  0x12   : > { %s155_s4 = scalar_lea.sflag (!%p104_p10), [#allocation3], %s119_s25  ;;  %s314_s5 = scalar_lea.vmem (!%p104_p10), %s475_s29, 128 }
  0x13   : > { %p315_p12 = scmp.ne.s32.totalorder (!%p104_p10), %s475_s29, %s314_s5 }
  0x14   : > { %v392_v0 = vmov 0   ;;  %v393_v1 = vmov 2   ;;  %s123_s20 = scalar_select %p122_p11, %s382_s9, 1  ;;  %v394_v3 = vmov 1   ;;  %v395_v4 = vmov 3  }
  0x15   : > { %309 = vset.pattern.permute.xlu0 %v392_v0  ;;  %311 = vset.pattern.permute.xlu1 %v393_v1  ;;  %v130_v5 = vlaneseq  ;;  %v396_v11 = vmov 0.0   ;;  %p316_p13 = pnand %p315_p12, %p448_p4  ;;  %s397_s9 = smov [#allocation2]  }
  0x16   : > { %s243_s21 = sshll.u32 %s123_s20, 3  ;;  %s318_s12 = sshll.u32 %s397_s9, 4  ;;  %s319_s12 = int_to_ptr.vmem [resolvable:$false] %s318_s12 }
  0x17   : > { %s125_s24 = scalar_lea.vmem %s519_s0, %s243_s21  ;;  %v131_v8 = vand.u32 127, %v130_v5  ;;  %p317_p0 = pneg %p316_p13 }
  0x18   : > { %v127_v2 = vld [vmem:[%s125_s24] sm:$0xff]  ;;  %s320_s13 = scalar_lea.vmem %s319_s12, 256  ;;  %p321_p1 = scmp.lt.s32.totalorder %s475_s29, %s319_s12 }
  0x19   : > { %133 = vperm.xlu0 %309, %v127_v2   ;;  %142 = vperm.xlu1 %311, %v127_v2   ;;  %p322_p2 = scmp.lt.s32.totalorder %s320_s13, %s314_s5 }
  0x1b   : > { %p323_p3 = por %p322_p2, %p321_p1 }
  0x1d   : > { %310 = vset.pattern.permute.xlu0 %v394_v3  ;;  %312 = vset.pattern.permute.xlu1 %v395_v4  ;;  %p324_p5 = pnand %p323_p3, %p317_p0 }
  0x1e   : > { %137 = vperm.xlu0 %310, %v127_v2   ;;  %147 = vperm.xlu1 %312, %v127_v2  }
  0x22   : > { %313 = vset.pattern.permute.xlu0 %v395_v4 }
  0x94   : > { %v134_v6 = vpop.permute.xlu0 %133  ;;  %v143_v7 = vpop.permute.xlu1 %142 }
  0x95   : > { %vm135_vm0 = vcmp.eq.s32.totalorder %v131_v8, %v134_v6  ;;  %vm144_vm3 = vcmp.eq.s32.totalorder %v131_v8, %v143_v7 }
  0x99   : > { %v138_v9 = vpop.permute.xlu0 %137  ;;  %v148_v10 = vpop.permute.xlu1 %147 }
  0x9a   : > { %vm139_vm1 = vcmp.eq.s32.totalorder %v131_v8, %v138_v9  ;;  %vm149_vm2 = vcmp.eq.s32.totalorder %v131_v8, %v148_v10 }
  0x9b   : > { %vm140_vm4 = vmor %vm135_vm0, %vm139_vm1 }
  0x9c   : > { %vm145_vm5 = vmor %vm140_vm4, %vm144_vm3 }
  0x9d   : > { %vm150_vm6 = vmor %vm145_vm5, %vm149_vm2 }
  0x9e   : > { %v244_v12 = vsel %vm150_vm6, 1.0, %v396_v11 }
  0x9f   : > { %153 = vst [vmem:[%s121_s28] sm:$0xff] %v244_v12 }
  0xa0   : > { %327 = shalt.err (!%p324_p5)
}
  0xa1   : > { %s328_s15 = scalar_lea.hbm %s473_s3, 128  ;;  %s332_s21 = scalar_lea.hbm %s520_s1, 256 }
  0xa2   : > { %p329_p6 = scmp.ne.s32.totalorder %s473_s3, %s328_s15  ;;  %p333_p10 = scmp.lt.s32.totalorder %s473_s3, %s520_s1 }
  0xa3   : > { %p334_p11 = scmp.lt.s32.totalorder %s332_s21, %s328_s15 }
  0xa4   : > { %p330_p7 = pnand %p329_p6, %p448_p4 }
  0xa5   : > { %p335_p12 = por %p334_p11, %p333_p10 }
  0xa6   : > { %p331_p9 = pneg %p330_p7 }
  0xa8   : > { %p336_p13 = pnand %p335_p12, %p331_p9 }
  0xaa   : > { %339 = shalt.err (!%p336_p13)
}
  0xab   : > { %249 = dma.vmem_to_hbm [thread:$0]  (%p448_p4), %s475_s29, 128, %s473_s3, %s155_s4  }
  0xac PF: > { %p255_p0 = scmp.ge.s32.totalorder %s390_s11, 2  ;;  %s181_s24 = sand.u32 1, %s370_s6  }
  0xad   : > { %s182_s25 = scalar_lea.sflag [#allocation3], %s181_s24 }
  0xae   : > { %p252_p1 = pnand %p255_p0, %p455_p8 }
  0xb0   : > { %p253_p2 = pneg %p252_p1 }
  0xb2   : > { %365 = dma.done.wait (%p253_p2), %s182_s25, 128  }
  0xb3   : > { %367 = vsyncadd (%p253_p2), %s182_s25, 4294967168  ;;  %s14_s11 = sadd.s32 1, %s390_s11   ;;  %s523_s6 = smov %s374_s7 }
  0xb4   : > { %p11_p3 = scmp.ge.s32.totalorder %s14_s11, 4   ;;  %s524_s7 = smov %s378_s8 }
  0xb5   : > { %s525_s8 = smov %s461_s19  ;;  %s526_s9 = smov %s386_s10 }
  0xb6   : > { %s527_s10 = smov %s529_s14  ;;  %13 = sbr.rel (!%p11_p3) target bundleno = 4 (0x4), region = 59 }
  0xbb   :  { %187 = vsyncpa [#allocation3], 1 }
  0xbc   :  { %189 = vsyncpa [#allocation3 + $0x1], 1 }

</bundles_post_ra>
